<compile_context>
chip_gen: v6e
topology: v6e:2x2x1
jax: 0.10.0
libtpu: 0.0.40
codegen_flags: <defaults>
</compile_context>

<pallas_src>
import math
import jax
import jax.numpy as jnp
from jax.experimental import pallas as pl
from jax.experimental.pallas import tpu as pltpu

_MIB = 1024 * 1024
# Double-buffered working-set target: fits comfortably in v7x's 64 MiB physical
# VMEM (with 8 MiB headroom) and is far under v5e/v6e's 128 MiB.
_DEFAULT_VMEM_BUDGET = 40 * _MIB


def _add_kernel(emb_ref, cond_ref, out_ref):
    # emb_ref:  (c_tile, HW)  -- emb[p, c0:c0+c_tile, :]
    # cond_ref: (c_tile, HW)  -- cond[b, p, c0:c0+c_tile, :] in its native dtype
    # out_ref:  (c_tile, HW)  -- out[b, c0:c0+c_tile, p*HW:(p+1)*HW]
    # The add promotes cond (e.g. bf16) to the param dtype on the VPU; the cast
    # on store lets callers request a narrower output dtype (bf16 recommended
    # for this write-bound op when the consumer tolerates it).
    out_ref[...] = (emb_ref[...] + cond_ref[...]).astype(out_ref.dtype)


def _bcast_kernel(emb_ref, out_ref):
    # No conditioning: the emb block stays resident in VMEM across the inner
    # batch axis, so this path is purely output-write-bound.
    out_ref[...] = emb_ref[...].astype(out_ref.dtype)


def _sublane_req(itemsizes):
    # Sub-32-bit dtypes pack along sublanes: keep the second-to-last (channel)
    # tile dense for the narrowest dtype so stores stay unmasked vst.
    #   f32 -> 8 rows, bf16/f16 -> 16, int8/fp8 -> 32.
    return max(32 // max(int(i), 1) for i in itemsizes)


def _choose_c_tile(C, HW, itemsizes, budget_bytes):
    """Largest channel tile whose double-buffered, all-stream footprint fits the
    VMEM budget.  A full-C block is always layout-legal; otherwise the tile must
    be a multiple of the dtype-dependent sublane packing (grid uses cdiv, so a
    ragged/masked last block is allowed when C has no suitable divisor)."""
    sub = _sublane_req(itemsizes)
    bytes_per_row = 2 * HW * sum(int(i) for i in itemsizes)  # 2 = double buffering
    max_rows = max(int(budget_bytes // bytes_per_row), 1)
    if C <= max_rows:
        return C  # single full-C block: fewest grid steps, biggest DMAs
    tile = max((max_rows // sub) * sub, sub)
    # Prefer an exact divisor of C nearby (avoids a masked ragged last block).
    for d in range(min(tile, C), max(tile // 2, sub - 1), -1):
        if d % sub == 0 and C % d == 0:
            return d
    return min(tile, C)


class TriplaneLearnablePositionalEmbedding:
    def __init__(self, num_channels: int = 1024, plane_size: int = 32, key=None,
                 param_dtype=jnp.float32):
        self.plane_size = plane_size
        self.num_channels = num_channels
        if key is None:
            key = jax.random.PRNGKey(0)
        # Deterministic init matching torch.randn(...) * 1/sqrt(C) in shape/scale.
        self.embeddings = (
            jax.random.normal(
                key, (3, num_channels, plane_size, plane_size), dtype=jnp.float32
            )
            * (1.0 / math.sqrt(num_channels))
        ).astype(param_dtype)

    def __call__(self, batch_size: int, cond_embeddings=None, out_dtype=None,
                 *, vmem_budget_bytes=_DEFAULT_VMEM_BUDGET):
        C = self.num_channels
        HW = self.plane_size * self.plane_size
        emb = self.embeddings.reshape(3, C, HW)  # reshape only, no transpose/copy

        cond = None
        if cond_embeddings is not None:
            # No wrapper-side cast: keep cond in its native dtype, upcast in-kernel.
            cond = cond_embeddings.reshape(batch_size, 3, C, HW)
            if out_dtype is None:
                out_dtype = jnp.result_type(emb.dtype, cond.dtype)
        elif out_dtype is None:
            out_dtype = emb.dtype
        out_dtype = jnp.dtype(out_dtype)

        if HW % 128 != 0:
            # TODO(synk): plane sizes where H*W is not a multiple of 128 put the
            # plane boundaries at unaligned lane offsets of the (B, C, 3*HW)
            # output; fall back to plain XLA (identical math, ~2x more HBM traffic).
            x = jnp.broadcast_to(emb[None], (batch_size, 3, C, HW))
            if cond is not None:
                x = x + cond
            return jnp.transpose(x, (0, 2, 1, 3)).reshape(
                batch_size, C, 3 * HW
            ).astype(out_dtype)

        # --- dtype-accurate tiling & VMEM budget (one entry per HBM stream) ---
        itemsizes = [emb.dtype.itemsize, out_dtype.itemsize]
        if cond is not None:
            itemsizes.insert(1, cond.dtype.itemsize)
        c_tile = _choose_c_tile(C, HW, itemsizes, vmem_budget_bytes)
        nc = pl.cdiv(C, c_tile)                      # ragged last block allowed
        footprint = 2 * c_tile * HW * sum(itemsizes)  # double-buffered working set
        vmem_limit = max(int(footprint) + 8 * _MIB, 16 * _MIB)

        # --- grid: (batch_groups, planes, C-tiles, batch-in-group) ------------
        # Leading even axis gives the v7x megacore a balanced 2-way split; the
        # innermost batch axis keeps the emb block resident (its index_map does
        # not depend on b or g), so the table is not re-fetched per batch element.
        G = 2 if (batch_size >= 2 and batch_size % 2 == 0) else 1
        Bi = batch_size // G
        grid = (G, 3, nc, Bi)

        compiler_params = pltpu.CompilerParams(
            dimension_semantics=("parallel", "parallel", "parallel", "arbitrary"),
            vmem_limit_bytes=vmem_limit,
        )

        emb_spec = pl.BlockSpec((pl.Squeezed(), c_tile, HW),
                                lambda g, p, c, b: (p, c, 0))
        # Output block for plane p lands at last-dim block index p of (B, C, 3*HW),
        # realizing 'B Np Ct Hp Wp -> B Ct (Np Hp Wp)' inside the pallas_call.
        out_spec = pl.BlockSpec((pl.Squeezed(), c_tile, HW),
                                lambda g, p, c, b: (g * Bi + b, c, p))
        out_shape = jax.ShapeDtypeStruct((batch_size, C, 3 * HW), out_dtype)

        if cond is not None:
            # NOTE: if a v5e trace ever shows the cond read stream not saturating
            # HBM, sweep pipeline_mode=pl.Buffered(3) on this spec.
            cond_spec = pl.BlockSpec((pl.Squeezed(), pl.Squeezed(), c_tile, HW),
                                     lambda g, p, c, b: (g * Bi + b, p, c, 0))
            return pl.pallas_call(
                _add_kernel,
                out_shape=out_shape,
                grid=grid,
                in_specs=[emb_spec, cond_spec],
                out_specs=out_spec,
                compiler_params=compiler_params,
            )(emb, cond)

        return pl.pallas_call(
            _bcast_kernel,
            out_shape=out_shape,
            grid=grid,
            in_specs=[emb_spec],
            out_specs=out_spec,
            compiler_params=compiler_params,
        )(emb)

    def detokenize(self, tokens):
        B, Ct, Nt = tokens.shape
        assert Nt == self.plane_size ** 2 * 3
        assert Ct == self.num_channels
        # 'B Ct (Np Hp Wp) -> B Np Ct Hp Wp' : reshape + transpose (pure layout glue)
        x = tokens.reshape(B, Ct, 3, self.plane_size, self.plane_size)
        return jnp.transpose(x, (0, 2, 1, 3, 4))


def _ref_forward(emb4, batch_size, cond=None, out_dtype=None):
    # Pure-JAX reference matching the PyTorch module.
    x = jnp.broadcast_to(emb4[None], (batch_size,) + emb4.shape)
    if cond is not None:
        x = x + cond
    x = jnp.transpose(x, (0, 2, 1, 3, 4)).reshape(batch_size, emb4.shape[1], -1)
    return x if out_dtype is None else x.astype(out_dtype)


if __name__ == "__main__":
    # Small shapes: batch=2, channels=32, plane_size=16 -> output (2, 32, 768)
    B, C, P = 2, 32, 16

    key = jax.random.PRNGKey(0)
    k_emb, k_cond, k_cond2 = jax.random.split(key, 3)

    mod = TriplaneLearnablePositionalEmbedding(num_channels=C, plane_size=P, key=k_emb)

    # --- cond path (f32 cond, f32 out: PyTorch default semantics) ---
    cond = jax.random.normal(k_cond, (B, 3, C, P, P), dtype=jnp.float32)
    out = jax.block_until_ready(mod(B, cond))
    ref = _ref_forward(mod.embeddings, B, cond)
    assert out.shape == (B, C, 3 * P * P) and out.dtype == jnp.float32
    assert jnp.allclose(out, ref, atol=1e-6), "mismatch (cond f32 path)"

    # --- cond path (bf16 cond): upcast happens inside the kernel ---
    cond_bf16 = cond.astype(jnp.bfloat16)
    out_b = jax.block_until_ready(mod(B, cond_bf16))
    ref_b = _ref_forward(mod.embeddings, B, cond_bf16)
    assert out_b.dtype == ref_b.dtype
    assert jnp.allclose(out_b, ref_b, atol=1e-6), "mismatch (cond bf16 path)"

    # --- bf16 OUTPUT path (cast-on-store; recommended for write-bound use) ---
    out_n = jax.block_until_ready(mod(B, cond, out_dtype=jnp.bfloat16))
    ref_n = _ref_forward(mod.embeddings, B, cond, out_dtype=jnp.bfloat16)
    assert out_n.dtype == jnp.bfloat16
    assert jnp.allclose(out_n.astype(jnp.float32), ref_n.astype(jnp.float32),
                        atol=1e-6), "mismatch (bf16 output path)"

    # --- no-cond broadcast path ---
    out2 = jax.block_until_ready(mod(B, None))
    ref2 = _ref_forward(mod.embeddings, B)
    assert jnp.allclose(out2, ref2, atol=1e-6), "mismatch (no-cond path)"

    # --- ragged channel tiling + odd batch (exercises cdiv grid / partial blocks
    #     and the G=1 core-group path) ---
    B3, C3 = 3, 24
    mod3 = TriplaneLearnablePositionalEmbedding(num_channels=C3, plane_size=P, key=k_emb)
    cond3 = jax.random.normal(k_cond2, (B3, 3, C3, P, P), dtype=jnp.float32)
    # Tiny budget forces c_tile=16 -> 2 channel blocks, last one ragged (8 rows).
    out3 = jax.block_until_ready(mod3(B3, cond3, vmem_budget_bytes=100_000))
    ref3 = _ref_forward(mod3.embeddings, B3, cond3)
    assert jnp.allclose(out3, ref3, atol=1e-6), "mismatch (ragged C-tiling path)"

    # Round-trip detokenize sanity check
    planes = mod3.detokenize(out3)
    assert planes.shape == (B3, 3, C3, P, P)

    print("KERNEL_OK")
</pallas_src>

<mosaic_0001>
module attributes {stable_mosaic.version = 11 : i64} {
  func.func @_add_kernel(%arg0: i32, %arg1: i32, %arg2: i32, %arg3: i32, %arg4: memref<1x32x256xf32, #tpu.memory_space<vmem>>, %arg5: memref<1x1x32x256xf32, #tpu.memory_space<vmem>>, %arg6: memref<1x32x256xf32, #tpu.memory_space<vmem>>) attributes {dimension_semantics = [#tpu.dimension_semantics<parallel>, #tpu.dimension_semantics<parallel>, #tpu.dimension_semantics<parallel>, #tpu.dimension_semantics<arbitrary>], iteration_bounds = array<i64: 2, 3, 1, 1>, scalar_prefetch = 0 : i64, scratch_operands = 0 : i64, tpu.core_type = #tpu.core_type<tc>, window_params = [{transform_indices = @transform_0, window_bounds = array<i64: 1, 32, 256>}, {transform_indices = @transform_1, window_bounds = array<i64: 1, 1, 32, 256>}, {transform_indices = @transform_2, window_bounds = array<i64: 1, 32, 256>}]} {
    %c0 = arith.constant 0 : index
    %c0_0 = arith.constant 0 : index
    %c0_1 = arith.constant 0 : index
    %0 = vector.load %arg4[%c0, %c0_0, %c0_1] : memref<1x32x256xf32, #tpu.memory_space<vmem>>, vector<1x32x256xf32>
    %1 = vector.shape_cast %0 : vector<1x32x256xf32> to vector<32x256xf32>
    %c0_2 = arith.constant 0 : index
    %c0_3 = arith.constant 0 : index
    %c0_4 = arith.constant 0 : index
    %c0_5 = arith.constant 0 : index
    %2 = vector.load %arg5[%c0_2, %c0_3, %c0_4, %c0_5] : memref<1x1x32x256xf32, #tpu.memory_space<vmem>>, vector<1x1x32x256xf32>
    %3 = vector.shape_cast %2 : vector<1x1x32x256xf32> to vector<32x256xf32>
    %4 = arith.addf %1, %3 : vector<32x256xf32>
    %c0_6 = arith.constant 0 : index
    %c0_7 = arith.constant 0 : index
    %c0_8 = arith.constant 0 : index
    %5 = vector.load %arg6[%c0_6, %c0_7, %c0_8] : memref<1x32x256xf32, #tpu.memory_space<vmem>>, vector<1x32x256xf32>
    %6 = vector.shape_cast %5 : vector<1x32x256xf32> to vector<32x256xf32>
    %7 = vector.shape_cast %4 : vector<32x256xf32> to vector<1x32x256xf32>
    tpu.vector_store %arg6[%c0_6, %c0_7, %c0_8], %7 {strides = array<i32>} : memref<1x32x256xf32, #tpu.memory_space<vmem>>, vector<1x32x256xf32>,
    return
  }
  func.func @transform_0(%arg0: i32, %arg1: i32, %arg2: i32, %arg3: i32) -> (i32, i32, i32) {
    %c0_i32 = arith.constant 0 : i32
    %c0_i32_0 = arith.constant 0 : i32
    return %arg1, %arg2, %c0_i32 : i32, i32, i32
  }
  func.func @transform_1(%arg0: i32, %arg1: i32, %arg2: i32, %arg3: i32) -> (i32, i32, i32, i32) {
    %c1_i32 = arith.constant 1 : i32
    %0 = arith.muli %arg0, %c1_i32 : i32
    %1 = arith.addi %0, %arg3 : i32
    %c0_i32 = arith.constant 0 : i32
    %c0_i32_0 = arith.constant 0 : i32
    return %1, %arg1, %arg2, %c0_i32 : i32, i32, i32, i32
  }
  func.func @transform_2(%arg0: i32, %arg1: i32, %arg2: i32, %arg3: i32) -> (i32, i32, i32) {
    %c1_i32 = arith.constant 1 : i32
    %0 = arith.muli %arg0, %c1_i32 : i32
    %1 = arith.addi %0, %arg3 : i32
    %c0_i32 = arith.constant 0 : i32
    return %1, %arg2, %arg1 : i32, i32, i32
  }
}

</mosaic_0001>

<bundles_post_ra>
// kernel: tpu_custom_call.1
= control target key start
LH: loop header
LB: loop body
LE: loop exit
PB: predicated region body
PF: predicated region fallthrough
CT: control target
= control target key end

     0   :  { %s1077_s0 = inlined_call_operand.hbm [shape: f32[3,32,256], index: 0, kind: input, shape index: {}]   ;;  %s1078_s1 = inlined_call_operand.hbm [shape: f32[2,3,32,256], index: 1, kind: input, shape index: {}]   ;;  %s1079_s2 = inlined_call_operand.hbm [shape: f32[2,32,768], index: 2, kind: output, shape index: {}]  }
   0x1   :  { %1087 = sst [smem:[#allocation16_spill]] %s1077_s0 }
   0x2   :  { %7 = vsyncpa [#allocation3], 0 }
   0x3   :  { %9 = vsyncpa [#allocation3 + $0x1], 0 }
   0x4   :  { %10 = vsyncpa [#allocation6], 0 }
   0x5   :  { %12 = vsyncpa [#allocation6 + $0x1], 0 }
   0x6   :  { %13 = vsyncpa [#allocation4], 0 }
   0x7   :  { %15 = vsyncpa [#allocation4 + $0x1], 0  ;;  %s776_s9 = smov 0   ;;  %s778_s10 = smov 0  }
   0x8   :  { %s780_s11 = smov 0   ;;  %s782_s12 = smov 0  }
   0x9   :  { %s784_s13 = smov 0   ;;  %s786_s14 = smov 0  }
   0xa   :  { %s788_s15 = smov 0   ;;  %s790_s16 = smov 0  }
   0xb   :  { %s792_s17 = smov 0   ;;  %s794_s18 = smov 0  }
   0xc   :  { %s796_s19 = smov 0  }
   0xd LB: > { %1088 = sst [smem:[#allocation11_spill]] %s731_s14  ;;  %s1080_s20 = sadd.s32 4294967295, %s751_s19   ;;  %s751_s19 = sphi %s796_s19, %s21_s19   ;;  %s747_s18 = sphi %s794_s18, %s1119_s18   ;;  %s743_s17 = sphi %s792_s17, %s1111_s17   ;;  %s739_s16 = sphi %s790_s16, %s1118_s16   ;;  %s735_s15 = sphi %s788_s15, %s1110_s15   ;;  %s731_s14 = sphi %s786_s14, %s1109_s14   ;;  %s727_s13 = sphi %s784_s13, %s1117_s13   ;;  %s723_s12 = sphi %s782_s12, %s1116_s12   ;;  %s719_s11 = sphi %s780_s11, %s1115_s11   ;;  %s715_s10 = sphi %s778_s10, %s1114_s10   ;;  %s711_s9 = sphi %s776_s9, %s1113_s9  }
   0xe   : > { %1089 = sst [smem:[#allocation12_spill]] %s743_s17  ;;  %s43_s21 = sadd.s32 1, %s743_s17 }
   0xf   : > { %p831_p0 = scmp.ge.s32.totalorder %s43_s21, 3  ;;  %s56_s23 = sadd.s32 1, %s731_s14 }
  0x10   : > { %p63_p1 = scmp.ne.s32.totalorder %s731_s14, %s727_s13  ;;  %p64_p2 = scmp.eq.s32.totalorder %s751_s19, 0 }
  0x11   : > { %s1121_s21 = smov (%p831_p0, %s43_s21), 0  ;;  %p69_p4 = scmp.ne.s32.totalorder %s727_s13, %s723_s12 }
  0x12   : > { %1091 = sst [smem:[#allocation13_spill]] %s1121_s21  ;;  %p845_p3 = por %p64_p2, %p63_p1 }
  0x13   : > { %s852_s25 = ssub.s32 %s743_s17, %s1121_s21  ;;  %p856_p5 = scmp.eq.s32.totalorder %s1080_s20, 0 }
  0x14   : > { %p54_p6 = scmp.eq.s32.totalorder %s852_s25, 0  ;;  %p476_p8 = scmp.lt.s32.totalorder %s751_s19, 6 }
  0x15   : > { %p863_p7 = por %p856_p5, %p69_p4  ;;  %s157_s29 = sand.u32 1, %s731_s14  }
  0x16   : > { %s869_s28 = scalar_select %p54_p6, %s731_s14, %s56_s23  }
  0x17   : > { %s456_s30 = sshll.u32 %s743_s17, 10  ;;  %s441_s3 = sshll.u32 %s157_s29, 6 }
  0x18   : > { %1095 = sst [smem:[#allocation14_spill]] %s869_s28  ;;  %s161_s7 = scalar_lea.vmem [#allocation2], %s441_s3 }
  0x19   : > { %s1096_s0 = sld [smem:[#allocation16_spill]]  ;;  %s171_s8 = sshll.u32 %s161_s7, 4  ;;  %s172_s8 = int_to_ptr.vmem [resolvable:$true] %s171_s8 }
  0x1a   : > { %p880_p9 = pnand %p476_p8, %p845_p3  ;;  %s158_s20 = scalar_lea.sflag [#allocation3], %s157_s29 }
  0x1b   : > { %s584_s23 = scalar_lea.vmem %s172_s8, 1024  ;;  %s753_s21 = smov [#allocation2]  }
  0x1c   : > { %p573_p10 = pneg %p880_p9  ;;  %p585_p11 = scmp.ne.s32.totalorder %s172_s8, %s584_s23 }
  0x1d   : > { %s589_s4 = sshll.u32 %s753_s21, 4  ;;  %s590_s4 = int_to_ptr.vmem [resolvable:$false] %s589_s4 }
  0x1e   : > { %p587_p12 = pnand %p585_p11, %p573_p10  ;;  %p592_p1 = scmp.lt.s32.totalorder %s172_s8, %s590_s4 }
  0x1f   : > { %s170_s6 = scalar_lea.hbm %s1096_s0, %s456_s30  ;;  %s591_s30 = scalar_lea.vmem %s590_s4, 2048 }
  0x20   : > { %p588_p13 = pneg %p587_p12  ;;  %p593_p4 = scmp.lt.s32.totalorder %s591_s30, %s584_s23 }
  0x22   : > { %p594_p6 = por %p593_p4, %p592_p1 }
  0x24   : > { %p595_p3 = pnand %p594_p6, %p588_p13 }
  0x26   : > { %598 = shalt.err (!%p595_p3)
}
  0x27   : > { %s1082_s24 = smov 256   ;;  %s1083_s21 = smov 16  }
  0x28   : > { %468 = dma.hbm_to_vmem [thread:$0]  (!%p880_p9), %s170_s6, 1024, %s172_s8, %s158_s20, %s1082_s24, %s1082_s24, %s1083_s21  }
  0x29   : > { %p447_p10 = scmp.ge.s32.totalorder %s751_s19, 1  ;;  %p206_p11 = scmp.lt.s32.totalorder %s751_s19, 7 }
  0x2a   : > { %s438_s3 = sadd.s32 4294967294, %s751_s19   ;;  %s47_s5 = sadd.s32 1, %s747_s18 }
  0x2b   : > { %p893_p12 = pnand %p447_p10, %p206_p11  ;;  %s88_s7 = sadd.s32 1, %s719_s11 }
  0x2c   : > { %s1123_s5 = smov (!%p831_p0, %s47_s5), %s747_s18  ;;  %p95_p13 = scmp.ne.s32.totalorder %s719_s11, %s715_s10 }
  0x2d   : > { %p101_p1 = scmp.ne.s32.totalorder %s715_s10, %s711_s9  ;;  %p49_p9 = scmp.ge.s32.totalorder %s1123_s5, 2 }
  0x2e   : > { %s1099_s20 = sadd.s32 4294967295, %s751_s19   ;;  %p911_p6 = por %p95_p13, %p64_p2 }
  0x2f   : > { %p131_p4 = scmp.eq.s32.totalorder %s1099_s20, 5  ;;  %p917_p3 = por %p101_p1, %p856_p5 }
  0x30   : > { %s1125_s5 = smov (%p49_p9, %s1123_s5), 0  ;;  %p137_p10 = scmp.eq.s32.totalorder %s438_s3, 5 }
  0x31   : > { %1102 = sst [smem:[#allocation15_spill]] %s1125_s5  ;;  %p923_p0 = por %p131_p4, %p95_p13 }
  0x32   : > { %s81_s12 = ssub.s32 %s747_s18, %s1125_s5  ;;  %s181_s23 = sand.u32 1, %s719_s11  }
  0x33   : > { %s83_s4 = sor.u32 %s81_s12, %s852_s25  ;;  %p931_p2 = por %p137_p10, %p101_p1 }
  0x34   : > { %p86_p11 = scmp.eq.s32.totalorder %s83_s4, 0  ;;  %s444_s26 = sshll.u32 %s181_s23, 6 }
  0x35   : > { %s445_s20 = sshll.u32 %s743_s17, 3  ;;  %s457_s21 = smul.u32 24, %s747_s18 }
  0x36   : > { %s937_s24 = scalar_select %p86_p11, %s719_s11, %s88_s7  }
  0x37   : > { %s185_s0 = scalar_lea.vmem [#allocation5], %s444_s26  ;;  %p944_p5 = pnand %p476_p8, %p911_p6 }
  0x38   : > { %s198_s28 = sshll.u32 %s185_s0, 4  ;;  %s195_s25 = sadd.s32 %s457_s21, %s445_s20  ;;  %s199_s28 = int_to_ptr.vmem [resolvable:$true] %s198_s28 }
  0x39   : > { %s446_s3 = sshll.u32 %s195_s25, 7  ;;  %s182_s17 = scalar_lea.sflag [#allocation6], %s181_s23 }
  0x3a   : > { %s197_s4 = scalar_lea.hbm %s1078_s1, %s446_s3  ;;  %p601_p13 = pneg %p944_p5 }
  0x3b   : > { %s612_s7 = scalar_lea.vmem %s199_s28, 1024  ;;  %s756_s0 = smov [#allocation5]  }
  0x3c   : > { %p613_p1 = scmp.ne.s32.totalorder %s199_s28, %s612_s7  ;;  %s617_s6 = sshll.u32 %s756_s0, 4  ;;  %s618_s6 = int_to_ptr.vmem [resolvable:$false] %s617_s6 }
  0x3d   : > { %s619_s26 = scalar_lea.vmem %s618_s6, 2048  ;;  %p620_p8 = scmp.lt.s32.totalorder %s199_s28, %s618_s6 }
  0x3e   : > { %p615_p9 = pnand %p613_p1, %p601_p13  ;;  %p621_p6 = scmp.lt.s32.totalorder %s619_s26, %s612_s7 }
  0x40   : > { %p616_p4 = pneg %p615_p9  ;;  %p622_p10 = por %p621_p6, %p620_p8 }
  0x42   : > { %p623_p11 = pnand %p622_p10, %p616_p4 }
  0x44   : > { %626 = shalt.err (!%p623_p11)
}
  0x45   : > { %s1106_s21 = smov 16   ;;  %s1107_s5 = smov 256  }
  0x46   : > { %471 = dma.hbm_to_vmem [thread:$0]  (!%p944_p5), %s197_s4, 1024, %s199_s28, %s182_s17, %s1107_s5, %s1107_s5, %s1106_s21  }
  0x47   : > { %210 = sbr.rel (%p893_p12) target bundleno = 109 (0x6d), region = 28  ;;  %s212_s23 = sand.u32 (!%p893_p12), 1, %s727_s13  }
  0x48   : > { %s448_s20 = sshll.u32 (!%p893_p12), %s212_s23, 6  ;;  %s213_s25 = scalar_lea.sflag (!%p893_p12), [#allocation3], %s212_s23 }
  0x49   : > { %s961_s3 = scalar_lea.vmem (!%p893_p12), [#allocation2], %s448_s20 }
  0x4c   : > { %698 = dma.done.wait (%p863_p7), %s213_s25, 1024  }
  0x4d   : > { %700 = vsyncadd (%p863_p7), %s213_s25, 4294966272  ;;  %s968_s14 = sand.u32 1, %s715_s10  }
  0x4e   : > { %s449_s17 = sshll.u32 %s968_s14, 6  ;;  %s222_s28 = scalar_lea.sflag [#allocation6], %s968_s14 }
  0x4f   : > { %s972_s29 = scalar_lea.vmem [#allocation5], %s449_s17 }
  0x50   : > { %702 = dma.done.wait (%p917_p3), %s222_s28, 1024  }
  0x51   : > { %704 = vsyncadd (%p917_p3), %s222_s28, 4294966272  ;;  %s458_s27 = smul.u32 24, %s739_s16  ;;  %s452_s12 = sshll.u32 %s735_s15, 1  ;;  %v257_v0 = vld [vmem:[%s961_s3] sm:$0xff]  ;;  %v258_v2 = vld [vmem:[%s961_s3 + $0x8] sm:$0xff] }
  0x52   : > { %v265_v1 = vld [vmem:[%s972_s29] sm:$0xff]  ;;  %s985_s4 = scalar_lea.vmem [#allocation7], %s449_s17  ;;  %v266_v4 = vld [vmem:[%s972_s29 + $0x8] sm:$0xff]  ;;  %v259_v5 = vld [vmem:[%s961_s3 + $0x10] sm:$0xff]  ;;  %s290_s26 = scalar_lea.sflag [#allocation4], %s968_s14 }
  0x53   : > { %s983_s8 = sadd.s32 %s458_s27, %s452_s12  ;;  %v273_v3 = vadd.f32 %v265_v1, %v257_v0  ;;  %s309_s7 = sshll.u32 %s985_s4, 4  ;;  %v267_v6 = vld [vmem:[%s972_s29 + $0x10] sm:$0xff]  ;;  %v274_v7 = vadd.f32 %v266_v4, %v258_v2  ;;  %v260_v9 = vld [vmem:[%s961_s3 + $0x18] sm:$0xff]  ;;  %v261_v11 = vld [vmem:[%s961_s3 + $0x20] sm:$0xff]  ;;  %s999_s7 = int_to_ptr.vmem [resolvable:$true] %s309_s7 }
  0x54   : > { %v275_v8 = vadd.f32 %v267_v6, %v259_v5  ;;  %v268_v10 = vld [vmem:[%s972_s29 + $0x18] sm:$0xff]  ;;  %v269_v13 = vld [vmem:[%s972_s29 + $0x20] sm:$0xff]  ;;  %v262_v14 = vld [vmem:[%s961_s3 + $0x28] sm:$0xff]  ;;  %s453_s15 = sshll.u32 %s983_s8, 7  ;;  %s627_s21 = scalar_lea.vmem %s999_s7, 1024 }
  0x55   : > { %281 = vst [vmem:[%s985_s4] sm:$0xff] %v273_v3  ;;  %v276_v12 = vadd.f32 %v268_v10, %v260_v9  ;;  %v270_v15 = vld [vmem:[%s972_s29 + $0x28] sm:$0xff]  ;;  %282 = vst [vmem:[%s985_s4 + $0x8] sm:$0xff] %v274_v7  ;;  %v277_v16 = vadd.f32 %v269_v13, %v261_v11  ;;  %v263_v18 = vld [vmem:[%s961_s3 + $0x30] sm:$0xff]  ;;  %s1013_s6 = scalar_lea.hbm %s1079_s2, %s453_s15  ;;  %p628_p7 = scmp.ne.s32.totalorder %s999_s7, %s627_s21 }
  0x56   : > { %283 = vst [vmem:[%s985_s4 + $0x10] sm:$0xff] %v275_v8  ;;  %v278_v17 = vadd.f32 %v270_v15, %v262_v14  ;;  %v271_v19 = vld [vmem:[%s972_s29 + $0x30] sm:$0xff]  ;;  %v264_v20 = vld [vmem:[%s961_s3 + $0x38] sm:$0xff]  ;;  %s757_s5 = smov [#allocation7]  }
  0x57   : > { %284 = vst [vmem:[%s985_s4 + $0x18] sm:$0xff] %v276_v12  ;;  %v279_v21 = vadd.f32 %v271_v19, %v263_v18  ;;  %v272_v22 = vld [vmem:[%s972_s29 + $0x38] sm:$0xff]  ;;  %285 = vst [vmem:[%s985_s4 + $0x20] sm:$0xff] %v277_v16  ;;  %p629_p12 = pnand %p628_p7, %p923_p0  ;;  %s631_s23 = sshll.u32 %s757_s5, 4  ;;  %s632_s23 = int_to_ptr.vmem [resolvable:$false] %s631_s23 }
  0x58   : > { %286 = vst [vmem:[%s985_s4 + $0x28] sm:$0xff] %v278_v17  ;;  %v280_v23 = vadd.f32 %v272_v22, %v264_v20  ;;  %s633_s20 = scalar_lea.vmem %s632_s23, 2048  ;;  %p634_p5 = scmp.lt.s32.totalorder %s999_s7, %s632_s23 }
  0x59   : > { %287 = vst [vmem:[%s985_s4 + $0x30] sm:$0xff] %v279_v21  ;;  %p630_p3 = pneg %p629_p12  ;;  %p635_p13 = scmp.lt.s32.totalorder %s633_s20, %s627_s21 }
  0x5a   : > { %288 = vst [vmem:[%s985_s4 + $0x38] sm:$0xff] %v280_v23 }
  0x5b   : > { %p636_p1 = por %p635_p13, %p634_p5 }
  0x5d   : > { %p637_p9 = pnand %p636_p1, %p630_p3 }
  0x5f   : > { %640 = shalt.err (!%p637_p9)
}
  0x60   : > { %s641_s25 = scalar_lea.hbm %s1013_s6, 1024  ;;  %s645_s28 = scalar_lea.hbm %s1079_s2, 6144 }
  0x61   : > { %p642_p4 = scmp.ne.s32.totalorder %s1013_s6, %s641_s25  ;;  %p646_p10 = scmp.lt.s32.totalorder %s1013_s6, %s1079_s2 }
  0x62   : > { %p647_p11 = scmp.lt.s32.totalorder %s645_s28, %s641_s25 }
  0x63   : > { %p643_p8 = pnand %p642_p4, %p923_p0 }
  0x64   : > { %p648_p7 = por %p647_p11, %p646_p10 }
  0x65   : > { %p644_p6 = pneg %p643_p8 }
  0x67   : > { %p649_p12 = pnand %p648_p7, %p644_p6 }
  0x69   : > { %652 = shalt.err (!%p649_p12)
}
  0x6a   : > { %s758_s12 = smov 256   ;;  %s759_s8 = smov 768  }
  0x6b   : > { %s760_s4 = smov 16  }
  0x6c   : > { %463 = dma.vmem_to_hbm [thread:$0]  (%p923_p0), %s999_s7, 1024, %s1013_s6, %s290_s26, %s758_s12, %s759_s8, %s760_s4  }
  0x6d PF: > { %p477_p3 = scmp.ge.s32.totalorder %s751_s19, 2  ;;  %s324_s15 = sand.u32 1, %s711_s9  }
  0x6e   : > { %s325_s16 = scalar_lea.sflag [#allocation4], %s324_s15 }
  0x6f   : > { %p473_p5 = pnand %p477_p3, %p931_p2 }
  0x71   : > { %p474_p13 = pneg %p473_p5 }
  0x73   : > { %706 = dma.done.wait (%p474_p13), %s325_s16, 1024  }
  0x74   : > { %708 = vsyncadd (%p474_p13), %s325_s16, 4294966272  ;;  %s21_s19 = sadd.s32 1, %s751_s19   ;;  %s1108_s22 = sld [smem:[#allocation11_spill]] }
  0x75   : > { %p18_p1 = scmp.ge.s32.totalorder %s21_s19, 8   ;;  %s1109_s14 = sld [smem:[#allocation14_spill]] }
  0x76   : > { %s1110_s15 = sld [smem:[#allocation12_spill]]  ;;  %s1113_s9 = smov %s715_s10 }
  0x77   : > { %s1111_s17 = sld [smem:[#allocation13_spill]]  ;;  %s1114_s10 = smov %s719_s11 }
  0x78   : > { %s1112_s7 = sld [smem:[#allocation15_spill]]  ;;  %s1115_s11 = smov %s937_s24 }
  0x79   : > { %s1116_s12 = smov %s727_s13  ;;  %s1118_s16 = smov %s747_s18 }
  0x7a   : > { %s1117_s13 = smov %s1108_s22  ;;  %20 = sbr.rel (!%p18_p1) target bundleno = 13 (0xd), region = 86 }
  0x7e   : > { %s1119_s18 = smov %s1112_s7 }
  0x7f   :  { %330 = vsyncpa [#allocation3], 1 }
  0x80   :  { %332 = vsyncpa [#allocation3 + $0x1], 1 }
  0x81   :  { %333 = vsyncpa [#allocation6], 1 }
  0x82   :  { %335 = vsyncpa [#allocation6 + $0x1], 1 }
  0x83   :  { %336 = vsyncpa [#allocation4], 1 }
  0x84   :  { %338 = vsyncpa [#allocation4 + $0x1], 1 }

</bundles_post_ra>
